<compile_context>
chip_gen: v7x
topology: tpu7x:2x2x1
jax: 0.10.0
libtpu: 0.0.40
codegen_flags: <defaults>
</compile_context>

<pallas_src>
import functools

import jax
import jax.numpy as jnp
from jax.experimental import pallas as pl
from jax.experimental.pallas import tpu as pltpu

EPS = 1e-4          # module default eps=0.0001
NEG_SLOPE = 0.01    # F.leaky_relu default
_MIB = 1024 * 1024


def _round_up(v, m):
    return ((v + m - 1) // m) * m


def _pick_tile_and_pad(dim, prefer, fallback):
    """Pick a lane-aligned tile and the padded dim it divides.

    Prefers a single tile if the (128-padded) dim is <= `prefer`; otherwise
    looks for a divisor in [prefer/2, prefer]; otherwise pads the dim up to a
    multiple of `fallback` so the tile never collapses to 128 on awkward sizes.
    """
    p128 = _round_up(dim, 128)
    if p128 <= prefer:
        return p128, p128
    t = prefer
    while t >= max(prefer // 2, 128):
        if p128 % t == 0:
            return t, p128
        t -= 128
    return fallback, _round_up(dim, fallback)


def _bn_leaky_relu(y, true_n, n_pad):
    """Fused BatchNorm1d (training stats, no affine) + leaky ReLU, all in f32."""
    inv_n = 1.0 / float(true_n)
    mean = jnp.sum(y, axis=0, keepdims=True) * inv_n          # zero pad rows add 0
    diff = y - mean
    if n_pad > true_n:
        # Mask padding rows so the centered (two-pass) variance stays exact.
        row = jax.lax.broadcasted_iota(jnp.int32, y.shape, 0)
        diff = jnp.where(row < true_n, diff, 0.0)
    var = jnp.sum(diff * diff, axis=0, keepdims=True) * inv_n  # biased, two-pass
    y_hat = diff * jax.lax.rsqrt(var + EPS)                    # EUP rsqrt
    return jnp.maximum(y_hat, NEG_SLOPE * y_hat)               # leaky ReLU


def _kernel_single(x_ref, w_ref, o_ref, *, true_n, n_pad):
    # x_ref: [N_p, in_f_p] bf16 (whole batch, resident)
    # w_ref: [in_f_p, TN]  bf16 (pre-transposed weight tile)
    y = jnp.dot(x_ref[...], w_ref[...], preferred_element_type=jnp.float32)
    o_ref[...] = _bn_leaky_relu(y, true_n, n_pad).astype(o_ref.dtype)


def _kernel_reduce(x_ref, w_ref, o_ref, acc_ref, *, tk, x_resident, true_n, n_pad):
    # Streamed-K variant: f32 accumulator persists across the k axis.
    k = pl.program_id(1)

    @pl.when(k == 0)
    def _init():
        acc_ref[...] = jnp.zeros_like(acc_ref)

    if x_resident:
        start = pl.multiple_of(k * tk, tk)
        x_blk = x_ref[:, pl.ds(start, tk)]
    else:
        x_blk = x_ref[...]

    acc_ref[...] += jnp.dot(x_blk, w_ref[...], preferred_element_type=jnp.float32)

    @pl.when(k == pl.num_programs(1) - 1)
    def _finalize():
        o_ref[...] = _bn_leaky_relu(acc_ref[...], true_n, n_pad).astype(o_ref.dtype)


def linear_bn_leaky_relu(x, weight, *, compute_dtype=jnp.bfloat16):
    """x: [N, in_features]; weight: [out_features, in_features] (PyTorch layout)."""
    n, in_f = x.shape
    out_f, in_f_w = weight.shape
    assert in_f_w == in_f
    out_dtype = x.dtype

    # --- generation-aware budgets -------------------------------------------
    try:
        info = pltpu.get_tpu_info()
        vmem_cap = int(getattr(info, "vmem_capacity_bytes", 64 * _MIB))
    except Exception:  # conservative fallback: assume v7x-sized VMEM
        vmem_cap = 64 * _MIB
    big_vmem = vmem_cap >= 96 * _MIB                      # v5e/v6e: 128 MiB
    resident_threshold = (32 if big_vmem else 10) * _MIB  # v7x: keep it small
    vmem_cap_use = max(min(vmem_cap - 12 * _MIB, 100 * _MIB), 16 * _MIB)

    csize = jnp.dtype(compute_dtype).itemsize
    osize = jnp.dtype(out_dtype).itemsize

    # --- shapes / tiling ------------------------------------------------------
    sub = 16 if csize < 4 else 8                 # sublane multiple for compute dtype
    n_p = _round_up(max(n, 1), sub)

    tn, out_f_p = _pick_tile_and_pad(out_f, prefer=512, fallback=256)
    in_f_128 = _round_up(in_f, 128)

    x_resident = (n_p * in_f_128 * csize) <= resident_threshold

    # Collapse the K reduction entirely when resident x + full-K W double
    # buffer + output tiles comfortably fit the budget.
    collapse_k = x_resident and (
        2 * in_f_128 * tn * csize + n_p * in_f_128 * csize
        + 2 * n_p * tn * osize + 6 * _MIB) <= vmem_cap_use

    if collapse_k:
        tk = in_f_p = in_f_128
    elif x_resident:
        tk, in_f_p = _pick_tile_and_pad(in_f, prefer=2048, fallback=512)
    else:
        # Bound the streamed (double-buffered) x block by a modest budget.
        x_budget = (24 if big_vmem else 12) * _MIB
        tk_cap = max(128, (x_budget // max(2 * n_p * csize, 1)) // 128 * 128)
        tk, in_f_p = _pick_tile_and_pad(
            in_f, prefer=max(128, min(2048, tk_cap)),
            fallback=max(128, min(512, tk_cap)))

    nj = out_f_p // tn
    nk = in_f_p // tk

    # --- pad + cast once in the wrapper --------------------------------------
    x_p = x
    if n_p != n or in_f_p != in_f:
        x_p = jnp.pad(x, ((0, n_p - n), (0, in_f_p - in_f)))
    x_p = x_p.astype(compute_dtype)

    w_t = weight.T                                      # one-time HBM transpose
    if in_f_p != in_f or out_f_p != out_f:
        w_t = jnp.pad(w_t, ((0, in_f_p - in_f), (0, out_f_p - out_f)))
    w_p = w_t.astype(compute_dtype)

    # --- grid / specs ---------------------------------------------------------
    if nk == 1:
        kernel = functools.partial(_kernel_single, true_n=n, n_pad=n_p)
        grid = (nj,)
        in_specs = [
            pl.BlockSpec((n_p, in_f_p), lambda j: (0, 0)),   # x resident
            pl.BlockSpec((in_f_p, tn), lambda j: (0, j)),    # W tile, full K
        ]
        out_specs = pl.BlockSpec((n_p, tn), lambda j: (0, j))
        scratch_shapes = []
        dims = ("parallel",)
        x_bufs, x_cols, w_rows, acc_bytes = 1, in_f_p, in_f_p, 0
    else:
        kernel = functools.partial(
            _kernel_reduce, tk=tk, x_resident=x_resident, true_n=n, n_pad=n_p)
        grid = (nj, nk)
        if x_resident:
            x_spec = pl.BlockSpec((n_p, in_f_p), lambda j, k: (0, 0))
            x_bufs, x_cols = 1, in_f_p
        else:
            x_spec = pl.BlockSpec((n_p, tk), lambda j, k: (0, k))
            x_bufs, x_cols = 2, tk
        in_specs = [x_spec, pl.BlockSpec((tk, tn), lambda j, k: (k, j))]
        out_specs = pl.BlockSpec((n_p, tn), lambda j, k: (0, j))
        scratch_shapes = [pltpu.VMEM((n_p, tn), jnp.float32)]
        dims = ("parallel", "arbitrary")
        w_rows, acc_bytes = tk, n_p * tn * 4

    est = (2 * w_rows * tn * csize             # W double buffer
           + x_bufs * n_p * x_cols * csize     # x (resident: single buffer)
           + 2 * n_p * tn * osize              # output double buffer
           + acc_bytes)                        # f32 accumulator (if any)
    vmem_limit = int(min(max(est + est // 2 + 4 * _MIB, 16 * _MIB), vmem_cap_use))

    out_p = pl.pallas_call(
        kernel,
        out_shape=jax.ShapeDtypeStruct((n_p, out_f_p), out_dtype),
        grid_spec=pltpu.PrefetchScalarGridSpec(
            num_scalar_prefetch=0,
            grid=grid,
            in_specs=in_specs,
            out_specs=out_specs,
            scratch_shapes=scratch_shapes,
        ),
        compiler_params=pltpu.CompilerParams(
            dimension_semantics=dims,
            vmem_limit_bytes=vmem_limit,
        ),
    )(x_p, w_p)

    if n_p != n or out_f_p != out_f:
        out_p = out_p[:n, :out_f]
    return out_p


def reference(x, weight, compute_dtype=jnp.float32):
    """Pure-JAX reference: Linear(no bias) -> BatchNorm1d(train stats) -> leaky ReLU."""
    y = jnp.dot(x.astype(compute_dtype), weight.T.astype(compute_dtype),
                preferred_element_type=jnp.float32)
    mean = y.mean(axis=0, keepdims=True)
    var = ((y - mean) ** 2).mean(axis=0, keepdims=True)     # biased batch variance
    y_hat = (y - mean) / jnp.sqrt(var + EPS)
    return jnp.where(y_hat >= 0, y_hat, NEG_SLOPE * y_hat)


if __name__ == "__main__":
    key = jax.random.PRNGKey(0)
    k_x, k_w = jax.random.split(key)

    N, IN_F, OUT_F = 8, 32, 64

    x = jax.random.normal(k_x, (N, IN_F), dtype=jnp.float32)
    # nn.Linear default init: U(-1/sqrt(in_features), 1/sqrt(in_features))
    bound = 1.0 / (IN_F ** 0.5)
    weight = jax.random.uniform(
        k_w, (OUT_F, IN_F), dtype=jnp.float32, minval=-bound, maxval=bound)

    out = jax.block_until_ready(linear_bn_leaky_relu(x, weight))

    # Exact-algorithm reference (bf16 matmul, f32 BN) and full-f32 sanity check.
    ref_match = jax.block_until_ready(
        reference(x, weight, compute_dtype=jnp.bfloat16))
    ref_f32 = jax.block_until_ready(
        reference(x, weight, compute_dtype=jnp.float32))

    assert out.shape == (N, OUT_F)
    assert jnp.allclose(out, ref_match, atol=2e-3, rtol=2e-3), \
        "mismatch vs matched (bf16-matmul) reference"
    assert jnp.allclose(out, ref_f32, atol=6e-2, rtol=6e-2), \
        "mismatch vs f32 reference"

    print("KERNEL_OK")
</pallas_src>

<mosaic_0001>
module attributes {stable_mosaic.version = 11 : i64} {
  func.func @_kernel_single(%arg0: i32, %arg1: memref<16x128xbf16, #tpu.memory_space<vmem>>, %arg2: memref<128x128xbf16, #tpu.memory_space<vmem>>, %arg3: memref<16x128xf32, #tpu.memory_space<vmem>>) attributes {dimension_semantics = [#tpu.dimension_semantics<parallel>], iteration_bounds = array<i64: 1>, scalar_prefetch = 0 : i64, scratch_operands = 0 : i64, tpu.core_type = #tpu.core_type<tc>, window_params = [{pipeline_mode = #tpu.pipeline_mode<synchronous>, transform_indices = @transform_0, window_bounds = array<i64: 16, 128>}, {transform_indices = @transform_1, window_bounds = array<i64: 128, 128>}, {transform_indices = @transform_2, window_bounds = array<i64: 16, 128>}]} {
    %c0 = arith.constant 0 : index
    %c0_0 = arith.constant 0 : index
    %0 = vector.load %arg1[%c0, %c0_0] : memref<16x128xbf16, #tpu.memory_space<vmem>>, vector<16x128xbf16>
    %c0_1 = arith.constant 0 : index
    %c0_2 = arith.constant 0 : index
    %1 = vector.load %arg2[%c0_1, %c0_2] : memref<128x128xbf16, #tpu.memory_space<vmem>>, vector<128x128xbf16>
    %cst = arith.constant dense<0.000000e+00> : vector<16x128xf32>
    %2 = tpu.matmul %0, %1, %cst {dimension_numbers = #tpu.dot_dimension_numbers<[1], [0], [0], [1], [0, 0, 1, 1], [], []>} : vector<16x128xbf16>, vector<128x128xbf16>, vector<16x128xf32> -> vector<16x128xf32>
    %cst_3 = arith.constant dense<0.000000e+00> : vector<128xf32>
    %3 = vector.multi_reduction <add>, %2, %cst_3 [0] : vector<16x128xf32> to vector<128xf32>
    %4 = vector.shape_cast %3 : vector<128xf32> to vector<1x128xf32>
    %cst_4 = arith.constant 1.250000e-01 : f32
    %5 = vector.broadcast %cst_4 : f32 to vector<1x128xf32>
    %6 = arith.mulf %4, %5 : vector<1x128xf32>
    %7 = vector.broadcast %6 : vector<1x128xf32> to vector<16x128xf32>
    %8 = arith.subf %2, %7 : vector<16x128xf32>
    %9 = tpu.iota {dimensions = array<i32: 0>} : vector<16x128xi32>
    %c8_i32 = arith.constant 8 : i32
    %10 = vector.broadcast %c8_i32 : i32 to vector<16x128xi32>
    %11 = arith.cmpi slt, %9, %10 : vector<16x128xi32>
    %cst_5 = arith.constant 0.000000e+00 : f32
    %12 = vector.broadcast %cst_5 : f32 to vector<16x128xf32>
    %13 = arith.select %11, %8, %12 : vector<16x128xi1>, vector<16x128xf32>
    %14 = arith.mulf %13, %13 : vector<16x128xf32>
    %cst_6 = arith.constant dense<0.000000e+00> : vector<128xf32>
    %15 = vector.multi_reduction <add>, %14, %cst_6 [0] : vector<16x128xf32> to vector<128xf32>
    %16 = vector.shape_cast %15 : vector<128xf32> to vector<1x128xf32>
    %cst_7 = arith.constant 1.250000e-01 : f32
    %17 = vector.broadcast %cst_7 : f32 to vector<1x128xf32>
    %18 = arith.mulf %16, %17 : vector<1x128xf32>
    %cst_8 = arith.constant 9.99999974E-5 : f32
    %19 = vector.broadcast %cst_8 : f32 to vector<1x128xf32>
    %20 = arith.addf %18, %19 : vector<1x128xf32>
    %21 = math.rsqrt %20 : vector<1x128xf32>
    %22 = vector.broadcast %21 : vector<1x128xf32> to vector<16x128xf32>
    %23 = arith.mulf %13, %22 : vector<16x128xf32>
    %cst_9 = arith.constant 0.00999999977 : f32
    %24 = vector.broadcast %cst_9 : f32 to vector<16x128xf32>
    %25 = arith.mulf %24, %23 : vector<16x128xf32>
    %26 = arith.maximumf %23, %25 : vector<16x128xf32>
    %c0_10 = arith.constant 0 : index
    %c0_11 = arith.constant 0 : index
    %27 = vector.load %arg3[%c0_10, %c0_11] : memref<16x128xf32, #tpu.memory_space<vmem>>, vector<16x128xf32>
    tpu.vector_store %arg3[%c0_10, %c0_11], %26 {strides = array<i32>} : memref<16x128xf32, #tpu.memory_space<vmem>>, vector<16x128xf32>,
    return
  }
  func.func @transform_0(%arg0: i32) -> (i32, i32) {
    %c0_i32 = arith.constant 0 : i32
    %c0_i32_0 = arith.constant 0 : i32
    %c0_i32_1 = arith.constant 0 : i32
    return %c0_i32, %c0_i32_0 : i32, i32
  }
  func.func @transform_1(%arg0: i32) -> (i32, i32) {
    %c0_i32 = arith.constant 0 : i32
    %c0_i32_0 = arith.constant 0 : i32
    return %c0_i32, %arg0 : i32, i32
  }
  func.func @transform_2(%arg0: i32) -> (i32, i32) {
    %c0_i32 = arith.constant 0 : i32
    %c0_i32_0 = arith.constant 0 : i32
    return %c0_i32, %arg0 : i32, i32
  }
}

</mosaic_0001>

<bundles_post_ra>
// kernel: tpu_custom_call.1
= control target key start
LH: loop header
LB: loop body
LE: loop exit
PB: predicated region body
PF: predicated region fallthrough
CT: control target
= control target key end

     0   :  { %7 = vsyncpa [#allocation3], 0  ;;  %s399_s0 = inlined_call_operand.hbm [shape: bf16[16,128], index: 0, kind: input, shape index: {}]   ;;  %s400_s1 = inlined_call_operand.hbm [shape: bf16[128,128], index: 1, kind: input, shape index: {}]   ;;  %s401_s2 = inlined_call_operand.hbm [shape: f32[16,128], index: 2, kind: output, shape index: {}]  }
   0x1   :  { %8 = vsyncpa [#allocation6], 0 }
   0x2   :  { %9 = vsyncpa [#allocation4], 0  ;;  %s339_s9 = smov [#allocation2]   ;;  %s267_s13 = scalar_lea.hbm %s399_s0, 128 }
   0x3   :  { %s15_s10 = sshll.u32 %s339_s9, 4  ;;  %p268_p0 = scmp.ne.s32.totalorder %s399_s0, %s267_s13  ;;  %s16_s10 = int_to_ptr.vmem [resolvable:$true] %s15_s10 }
   0x4   :  { %p271_p1 = scmp.lt.u32.totalorder %s267_s13, %s399_s0 }
   0x6   :  { %p273_p2 = pnand %p271_p1, %p268_p0 }
   0x8   :  { %276 = shalt.err (!%p273_p2)
}
   0x9   :  { %s277_s18 = scalar_lea.vmem %s16_s10, 128  ;;  %p282_p4 = scmp.lt.s32.totalorder %s16_s10, %s16_s10 }
   0xa   :  { %p278_p3 = scmp.ne.s32.totalorder %s16_s10, %s277_s18  ;;  %p283_p5 = scmp.lt.s32.totalorder %s277_s18, %s277_s18 }
   0xc   :  { %p284_p6 = por %p283_p5, %p282_p4 }
   0xe   :  { %p285_p7 = pnand %p284_p6, %p278_p3 }
  0x10   :  { %288 = shalt.err (!%p285_p7)
}
  0x11   :  { %s340_s19 = smov 64   ;;  %s341_s20 = smov 4  }
  0x12   :  { %21 = dma.hbm_to_vmem [thread:$0]  %s399_s0, 128, %s16_s10, [#allocation3], %s340_s19, %s340_s19, %s341_s20  }
  0x13   :  { %s342_s23 = smov [#allocation5]   ;;  %s289_s27 = scalar_lea.hbm %s400_s1, 1024 }
  0x14   :  { %s27_s24 = sshll.u32 %s342_s23, 4  ;;  %p290_p8 = scmp.ne.s32.totalorder %s400_s1, %s289_s27  ;;  %s28_s24 = int_to_ptr.vmem [resolvable:$true] %s27_s24 }
  0x15   :  { %p293_p9 = scmp.lt.u32.totalorder %s289_s27, %s400_s1 }
  0x17   :  { %p295_p10 = pnand %p293_p9, %p290_p8 }
  0x19   :  { %298 = shalt.err (!%p295_p10)
}
  0x1a   :  { %s299_s4 = scalar_lea.vmem %s28_s24, 1024  ;;  %p304_p12 = scmp.lt.s32.totalorder %s28_s24, %s28_s24 }
  0x1b   :  { %p300_p11 = scmp.ne.s32.totalorder %s28_s24, %s299_s4  ;;  %p305_p13 = scmp.lt.s32.totalorder %s299_s4, %s299_s4 }
  0x1d   :  { %p306_p0 = por %p305_p13, %p304_p12 }
  0x1f   :  { %p307_p1 = pnand %p306_p0, %p300_p11 }
  0x21   :  { %310 = shalt.err (!%p307_p1)
}
  0x22   :  { %33 = dma.hbm_to_vmem [thread:$0]  %s400_s1, 1024, %s28_s24, [#allocation6], %s340_s19, %s340_s19, %s341_s20  }
  0x23   :  { %333 = dma.done.wait [#allocation3], 128  }
  0x24   :  { %334 = vsyncadd [#allocation3], 4294967168 }
  0x25   :  { %335 = dma.done.wait [#allocation6], 1024  }
  0x26   :  { %336 = vsyncadd [#allocation6], 4294966272  ;;  %v343_v0 = vmov 0.0   ;;  %vm344_vm0 = vmmov 0   ;;  %v256_v1 = vld [vmem:[#allocation5] sm:$0xff]   ;;  %v257_v2 = vld [vmem:[#allocation5 + $0x8] sm:$0xff]  }
  0x27   :  { %227 = vmatprep.subr.bf16.mxu0 %v343_v0  ;;  %243 = vmatprep.mubr.msk.bf16.mxu0 %vm344_vm0, %v343_v0  ;;  %v258_v3 = vld [vmem:[#allocation5 + $0x10] sm:$0xff]   ;;  %v259_v4 = vld [vmem:[#allocation5 + $0x18] sm:$0xff]   ;;  %v260_v5 = vld [vmem:[#allocation5 + $0x20] sm:$0xff]   ;;  %s345_s1 = smov [#allocation7]  }
  0x28   :  { %228 = vmatpush3.bf16.msra.mxu0 %v256_v1  ;;  %v261_v6 = vld [vmem:[#allocation5 + $0x28] sm:$0xff]   ;;  %v262_v7 = vld [vmem:[#allocation5 + $0x30] sm:$0xff]   ;;  %v263_v8 = vld [vmem:[#allocation5 + $0x38] sm:$0xff]   ;;  %s196_s6 = sshll.u32 %s345_s1, 4  ;;  %s197_s6 = int_to_ptr.vmem [resolvable:$true] %s196_s6 }
  0x29   :  { %229 = vmatprep.subr.bf16.mxu0 %v343_v0  ;;  %v264_v9 = vld [vmem:[#allocation2] sm:$0xff]   ;;  %s311_s7 = scalar_lea.vmem %s197_s6, 256  ;;  %p316_p3 = scmp.lt.s32.totalorder %s197_s6, %s197_s6 }
  0x2a   :  { %p312_p2 = scmp.ne.s32.totalorder %s197_s6, %s311_s7  ;;  %p317_p4 = scmp.lt.s32.totalorder %s311_s7, %s311_s7 }
  0x2c   :  { %230 = vmatpush3.bf16.msra.mxu0 %v257_v2  ;;  %p318_p5 = por %p317_p4, %p316_p3 }
  0x2d   :  { %231 = vmatprep.subr.bf16.mxu0 %v343_v0 }
  0x2e   :  { %p319_p6 = pnand %p318_p5, %p312_p2 }
  0x30   :  { %232 = vmatpush3.bf16.msra.mxu0 %v258_v3 }
  0x31   :  { %233 = vmatprep.subr.bf16.mxu0 %v343_v0 }
  0x34   :  { %234 = vmatpush3.bf16.msra.mxu0 %v259_v4 }
  0x35   :  { %235 = vmatprep.subr.bf16.mxu0 %v343_v0 }
  0x38   :  { %236 = vmatpush3.bf16.msra.mxu0 %v260_v5 }
  0x39   :  { %237 = vmatprep.subr.bf16.mxu0 %v343_v0 }
  0x3c   :  { %238 = vmatpush3.bf16.msra.mxu0 %v261_v6 }
  0x3d   :  { %239 = vmatprep.subr.bf16.mxu0 %v343_v0 }
  0x40   :  { %240 = vmatpush3.bf16.msra.mxu0 %v262_v7 }
  0x41   :  { %241 = vmatprep.subr.bf16.mxu0 %v343_v0 }
  0x44   :  { %242 = vmatpush3.bf16.msra.mxu0 %v263_v8 }
  0x47   :  { %244 = vmatmul.mubr.bf16.vlgmr.msra.gmra.mrb[0].mxu0 %v264_v9 }
 0x11a   :  { %v147_v10 = vpop.f32.mrb[0].mxu0 }
 0x11b   :  { %v245_v11 = vpop.f32.mrb[1].mxu0 }
 0x11c   :  { %v150_v12 = vpop.f32.mrb[2].mxu0 }
 0x11d   :  { %v154_v13 = vadd.f32 %v150_v12, %v147_v10  ;;  %v246_v14 = vpop.f32.mrb[3].mxu0 }
 0x11f   :  { %v155_v15 = vrot.slane %v154_v13, 4 }
 0x121   :  { %v156_v16 = vadd.f32 %v155_v15, %v154_v13 }
 0x123   :  { %v157_v17 = vrot.slane %v156_v16, 2 }
 0x125   :  { %v158_v18 = vadd.f32 %v157_v17, %v156_v16 }
 0x127   :  { %v159_v19 = vrot.slane %v158_v18, 1 }
 0x129   :  { %v160_v20 = vadd.f32 %v159_v19, %v158_v18 }
 0x12b   :  { %v161_v21 = vmul.f32 0.125, %v160_v20 }
 0x12d   :  { %v162_v22 = vsub.f32 %v147_v10, %v161_v21 }
 0x12f   :  { %v171_v23 = vmul.f32 %v162_v22, %v162_v22 }
 0x131   :  { %v174_v24 = vrot.slane %v171_v23, 4 }
 0x133   :  { %v175_v25 = vadd.f32 %v174_v24, %v171_v23 }
 0x135   :  { %v176_v26 = vrot.slane %v175_v25, 2 }
 0x137   :  { %v177_v27 = vadd.f32 %v176_v26, %v175_v25 }
 0x139   :  { %v178_v28 = vrot.slane %v177_v27, 1 }
 0x13b   :  { %v179_v29 = vadd.f32 %v178_v28, %v177_v27 }
 0x13d   :  { %v180_v30 = vmul.f32 0.125, %v179_v29 }
 0x13f   :  { %v181_v31 = vadd.f32 0.0001, %v180_v30 }
 0x141   :  { %265 = vrsqrt.f32 %v181_v31 }
 0x14b   :  { %v266_v32 = vpop.eup %265 }
 0x14c   :  { %v183_v33 = vmul.f32 %v266_v32, %v162_v22  ;;  %v184_v34 = vmul.f32 0.0, %v266_v32 }
 0x14e   :  { %v185_v35 = vmul.f32 0.01, %v183_v33  ;;  %v186_v36 = vmul.f32 0.01, %v184_v34 }
 0x150   :  { %v187_v37 = vmax.f32 %v183_v33, %v185_v35  ;;  %v188_v38 = vmax.f32 %v184_v34, %v186_v36 }
 0x152   :  { %189 = vst [vmem:[#allocation7] sm:$0xff] %v187_v37  ;;  %190 = vst [vmem:[#allocation7 + $0x8] sm:$0xff] %v188_v38 }
 0x153   :  { %322 = shalt.err (!%p319_p6)
}
 0x154   :  { %s323_s10 = scalar_lea.hbm %s401_s2, 256 }
 0x155   :  { %p324_p7 = scmp.ne.s32.totalorder %s401_s2, %s323_s10  ;;  %p327_p8 = scmp.lt.u32.totalorder %s323_s10, %s401_s2 }
 0x157   :  { %p329_p9 = pnand %p327_p8, %p324_p7 }
 0x159   :  { %332 = shalt.err (!%p329_p9)
}
 0x15a   :  { %s346_s15 = smov 128   ;;  %s347_s16 = smov 8  }
 0x15b   :  { %202 = dma.vmem_to_hbm [thread:$0]  %s197_s6, 256, %s401_s2, [#allocation4], %s346_s15, %s346_s15, %s347_s16  }
 0x15c   :  { %337 = dma.done.wait [#allocation4], 256  }
 0x15d   :  { %338 = vsyncadd [#allocation4], 4294967040 }
 0x15e   :  { %206 = vsyncpa [#allocation3], 1 }
 0x15f   :  { %207 = vsyncpa [#allocation6], 1 }
 0x160   :  { %208 = vsyncpa [#allocation4], 1 }

</bundles_post_ra>
